<compile_context>
chip_gen: v7x
topology: tpu7x:2x2x1
jax: 0.10.0
libtpu: 0.0.40
codegen_flags: <defaults>
</compile_context>

<pallas_src>
import functools

import jax
import jax.numpy as jnp
from jax.experimental import pallas as pl
from jax.experimental.pallas import tpu as pltpu


_VMEM_BLOCK_BUDGET = 40 << 20   # input block, double-buffered; fits v7x 64 MiB
_VMEM_LIMIT_BYTES = 48 << 20    # safe on v5e/v6e (128 MiB) and v7x (64 MiB)
_MAX_BATCH_BLOCK = 64
_SQRT_2_OVER_PI = 0.7978845608028654


def _gelu_tanh(x):
    # tanh-approximate GELU (EUP tanh); identical helper used in the reference.
    return 0.5 * x * (1.0 + jnp.tanh(_SQRT_2_OVER_PI * (x + 0.044715 * x * x * x)))


def cc_kernel(x_ref,
              w1m_ref, b1m_ref, w2m_ref, b2m_ref,
              w1s_ref, b1s_ref, w2s_ref, b2s_ref,
              o_ref, s1_acc, s2_acc, *, inv_hw, inv_hwm1):
    # x_ref  : (Bb, C, THW)   spatial tile, padded lanes are zero
    # w1*_ref: (C, Cr)        Linear(C->Cr) weight, pre-transposed
    # b1*_ref: (1, Cr)
    # w2*_ref: (Cr, C)        Linear(Cr->C) weight, pre-transposed
    # b2*_ref: (1, C)
    # o_ref  : (Bb, 1, C)     channel attention map (channels on lanes)
    # s1_acc, s2_acc: (Bb, C) f32 running sum / sum-of-squares
    t = pl.program_id(1)

    @pl.when(t == 0)
    def _():
        s1_acc[...] = jnp.zeros_like(s1_acc)
        s2_acc[...] = jnp.zeros_like(s2_acc)

    xb = x_ref[...].astype(jnp.float32)                 # (Bb, C, THW)
    # Padded lanes are zero, so plain lane-sums are exact.
    s1_acc[...] += jnp.sum(xb, axis=-1)                 # (Bb, C)
    s2_acc[...] += jnp.sum(xb * xb, axis=-1)            # (Bb, C)

    @pl.when(t == pl.num_programs(1) - 1)
    def _():
        s1 = s1_acc[...]
        mean = s1 * inv_hw                              # (Bb, C)
        # Unbiased variance (ddof=1), matching torch.std's default.
        var = (s2_acc[...] - mean * s1) * inv_hwm1
        std = jnp.sqrt(jnp.maximum(var, 0.0))           # (Bb, C)

        # Mean branch: Linear -> GELU -> Linear -> Sigmoid.
        hm = _gelu_tanh(jnp.dot(mean, w1m_ref[...],
                                preferred_element_type=jnp.float32) + b1m_ref[...])
        am = jax.nn.sigmoid(jnp.dot(hm, w2m_ref[...],
                                    preferred_element_type=jnp.float32) + b2m_ref[...])

        # Std branch: Linear -> GELU -> Linear -> Sigmoid.
        hs = _gelu_tanh(jnp.dot(std, w1s_ref[...],
                                preferred_element_type=jnp.float32) + b1s_ref[...])
        a_s = jax.nn.sigmoid(jnp.dot(hs, w2s_ref[...],
                                     preferred_element_type=jnp.float32) + b2s_ref[...])

        cc = 0.5 * (am + a_s)                           # (Bb, C)
        o_ref[...] = cc[:, None, :].astype(o_ref.dtype)


def _pick_spatial_tile(C, HWp, itemsize):
    """Largest multiple-of-128 divisor of HWp whose (double-buffered, Bb=1)
    input block fits the VMEM budget."""
    n128 = HWp // 128
    for d in range(n128, 0, -1):
        if n128 % d == 0 and 2 * C * d * 128 * itemsize <= _VMEM_BLOCK_BUDGET:
            return d * 128
    return 128


def _pick_batch_block(B, C, THW, itemsize):
    """Largest divisor of B whose double-buffered input block fits the budget,
    capped at B//2 so the 'parallel' grid axis keeps >= 2 steps (both v7x TCs)."""
    slab = C * THW * itemsize
    bb = max(1, _VMEM_BLOCK_BUDGET // (2 * slab))
    bb = min(bb, _MAX_BATCH_BLOCK, B)
    if B >= 2:
        bb = min(bb, max(1, B // 2))
    bb = max(1, bb)
    while B % bb:
        bb -= 1
    return bb


def cc_attention(x, w1m, b1m, w2m, b2m, w1s, b1s, w2s, b2s):
    """CC.forward: x (B, C, H, W) -> attention map (B, C, 1, 1).

    w1*: (Cr, C) torch Linear(C, Cr) weight;  b1*: (Cr,)
    w2*: (C, Cr) torch Linear(Cr, C) weight;  b2*: (C,)
    """
    B, C, H, W = x.shape
    HW = H * W
    Cr = w1m.shape[0]
    itemsize = jnp.dtype(x.dtype).itemsize

    # Lane-dense layout: flatten spatial, zero-pad to a multiple of 128.
    HWp = ((HW + 127) // 128) * 128
    x_flat = x.reshape(B, C, HW)
    if HWp != HW:
        x_flat = jnp.pad(x_flat, ((0, 0), (0, 0), (0, HWp - HW)))

    # Pre-transpose weights (torch Linear does v @ W.T + b); 2-D biases.
    w1m_t = w1m.T.astype(jnp.float32)            # (C, Cr)
    w2m_t = w2m.T.astype(jnp.float32)            # (Cr, C)
    w1s_t = w1s.T.astype(jnp.float32)
    w2s_t = w2s.T.astype(jnp.float32)
    b1m_r = b1m.reshape(1, Cr).astype(jnp.float32)
    b2m_r = b2m.reshape(1, C).astype(jnp.float32)
    b1s_r = b1s.reshape(1, Cr).astype(jnp.float32)
    b2s_r = b2s.reshape(1, C).astype(jnp.float32)

    THW = _pick_spatial_tile(C, HWp, itemsize)
    Bb = _pick_batch_block(B, C, THW, itemsize)
    n_t = HWp // THW

    kernel = functools.partial(cc_kernel,
                               inv_hw=1.0 / HW,
                               inv_hwm1=1.0 / max(HW - 1, 1))

    # Bandwidth-bound: one read of x dominates; MLP flops are negligible.
    cost = pl.CostEstimate(
        flops=int(3 * B * C * HW + 8 * B * C * Cr),
        transcendentals=int(2 * B * (C + Cr)),
        bytes_accessed=int(B * C * HW * itemsize + B * C * 4),
    )

    def param_spec(shape):
        return pl.BlockSpec(shape, lambda b, t: (0, 0))

    out = pl.pallas_call(
        kernel,
        out_shape=jax.ShapeDtypeStruct((B, 1, C), jnp.float32),
        grid_spec=pltpu.PrefetchScalarGridSpec(
            num_scalar_prefetch=0,
            grid=(B // Bb, n_t),
            in_specs=[
                pl.BlockSpec((Bb, C, THW), lambda b, t: (b, 0, t)),
                param_spec((C, Cr)), param_spec((1, Cr)),
                param_spec((Cr, C)), param_spec((1, C)),
                param_spec((C, Cr)), param_spec((1, Cr)),
                param_spec((Cr, C)), param_spec((1, C)),
            ],
            out_specs=pl.BlockSpec((Bb, 1, C), lambda b, t: (b, 0, 0)),
            scratch_shapes=[pltpu.VMEM((Bb, C), jnp.float32),
                            pltpu.VMEM((Bb, C), jnp.float32)],
        ),
        compiler_params=pltpu.CompilerParams(
            dimension_semantics=("parallel", "arbitrary"),
            vmem_limit_bytes=_VMEM_LIMIT_BYTES,
        ),
        cost_estimate=cost,
    )(x_flat, w1m_t, b1m_r, w2m_t, b2m_r, w1s_t, b1s_r, w2s_t, b2s_r)

    return out[:, 0, :].reshape(B, C, 1, 1)


def reference(x, w1m, b1m, w2m, b2m, w1s, b1s, w2s, b2s):
    """Pure-JAX CC.forward reference."""
    B, C, H, W = x.shape
    mean = jnp.mean(x, axis=(2, 3))                           # (B, C)
    std = jnp.std(x.reshape(B, C, -1), axis=2, ddof=1)        # (B, C), unbiased

    def mlp(v, w1, b1, w2, b2):
        h = _gelu_tanh(v @ w1.T + b1)
        return jax.nn.sigmoid(h @ w2.T + b2)

    cc = 0.5 * (mlp(mean, w1m, b1m, w2m, b2m) + mlp(std, w1s, b1s, w2s, b2s))
    return cc.reshape(B, C, 1, 1)


if __name__ == "__main__":
    # nFeat=50 (LatticeNet_sa default), CC reduction=16 -> hidden=3, small spatial.
    B, C, H, W = 2, 50, 16, 16
    reduction = 16
    Cr = C // reduction

    key = jax.random.PRNGKey(0)
    keys = jax.random.split(key, 9)
    x = jax.random.normal(keys[0], (B, C, H, W), dtype=jnp.float32)
    w1m = jax.random.normal(keys[1], (Cr, C), dtype=jnp.float32) * 0.2
    b1m = jax.random.normal(keys[2], (Cr,), dtype=jnp.float32) * 0.1
    w2m = jax.random.normal(keys[3], (C, Cr), dtype=jnp.float32) * 0.2
    b2m = jax.random.normal(keys[4], (C,), dtype=jnp.float32) * 0.1
    w1s = jax.random.normal(keys[5], (Cr, C), dtype=jnp.float32) * 0.2
    b1s = jax.random.normal(keys[6], (Cr,), dtype=jnp.float32) * 0.1
    w2s = jax.random.normal(keys[7], (C, Cr), dtype=jnp.float32) * 0.2
    b2s = jax.random.normal(keys[8], (C,), dtype=jnp.float32) * 0.1

    out = jax.block_until_ready(
        cc_attention(x, w1m, b1m, w2m, b2m, w1s, b1s, w2s, b2s))
    ref = reference(x, w1m, b1m, w2m, b2m, w1s, b1s, w2s, b2s)

    assert out.shape == (B, C, 1, 1)
    assert jnp.allclose(out, ref, atol=2e-5, rtol=1e-5), "mismatch vs reference"
    print("KERNEL_OK")
</pallas_src>

<mosaic_0001>
module attributes {stable_mosaic.version = 11 : i64} {
  func.func @cc_kernel(%arg0: i32, %arg1: i32, %arg2: memref<1x50x256xf32, #tpu.memory_space<vmem>>, %arg3: memref<50x3xf32, #tpu.memory_space<vmem>>, %arg4: memref<1x3xf32, #tpu.memory_space<vmem>>, %arg5: memref<3x50xf32, #tpu.memory_space<vmem>>, %arg6: memref<1x50xf32, #tpu.memory_space<vmem>>, %arg7: memref<50x3xf32, #tpu.memory_space<vmem>>, %arg8: memref<1x3xf32, #tpu.memory_space<vmem>>, %arg9: memref<3x50xf32, #tpu.memory_space<vmem>>, %arg10: memref<1x50xf32, #tpu.memory_space<vmem>>, %arg11: memref<1x1x50xf32, #tpu.memory_space<vmem>>, %arg12: memref<1x50xf32, #tpu.memory_space<vmem>>, %arg13: memref<1x50xf32, #tpu.memory_space<vmem>>) attributes {dimension_semantics = [#tpu.dimension_semantics<parallel>, #tpu.dimension_semantics<arbitrary>], iteration_bounds = array<i64: 2, 1>, scalar_prefetch = 0 : i64, scratch_operands = 2 : i64, tpu.core_type = #tpu.core_type<tc>, window_params = [{transform_indices = @transform_0, window_bounds = array<i64: 1, 50, 256>}, {pipeline_mode = #tpu.pipeline_mode<synchronous>, transform_indices = @transform_1, window_bounds = array<i64: 50, 3>}, {pipeline_mode = #tpu.pipeline_mode<synchronous>, transform_indices = @transform_2, window_bounds = array<i64: 1, 3>}, {pipeline_mode = #tpu.pipeline_mode<synchronous>, transform_indices = @transform_3, window_bounds = array<i64: 3, 50>}, {pipeline_mode = #tpu.pipeline_mode<synchronous>, transform_indices = @transform_4, window_bounds = array<i64: 1, 50>}, {pipeline_mode = #tpu.pipeline_mode<synchronous>, transform_indices = @transform_5, window_bounds = array<i64: 50, 3>}, {pipeline_mode = #tpu.pipeline_mode<synchronous>, transform_indices = @transform_6, window_bounds = array<i64: 1, 3>}, {pipeline_mode = #tpu.pipeline_mode<synchronous>, transform_indices = @transform_7, window_bounds = array<i64: 3, 50>}, {pipeline_mode = #tpu.pipeline_mode<synchronous>, transform_indices = @transform_8, window_bounds = array<i64: 1, 50>}, {transform_indices = @transform_9, window_bounds = array<i64: 1, 1, 50>}]} {
    %c0_i32 = arith.constant 0 : i32
    %0 = arith.cmpi eq, %arg1, %c0_i32 : i32
    %1 = arith.extui %0 : i1 to i32
    %c0_i32_0 = arith.constant 0 : i32
    %2 = arith.cmpi ne, %1, %c0_i32_0 : i32
    scf.if %2 {
      %cst_14 = arith.constant 0.000000e+00 : f32
      %16 = vector.broadcast %cst_14 : f32 to vector<1x50xf32>
      %c0_15 = arith.constant 0 : index
      %c0_16 = arith.constant 0 : index
      %17 = vector.load %arg12[%c0_15, %c0_16] : memref<1x50xf32, #tpu.memory_space<vmem>>, vector<1x50xf32>
      tpu.vector_store %arg12[%c0_15, %c0_16], %16 {strides = array<i32>} : memref<1x50xf32, #tpu.memory_space<vmem>>, vector<1x50xf32>,
      %cst_17 = arith.constant 0.000000e+00 : f32
      %18 = vector.broadcast %cst_17 : f32 to vector<1x50xf32>
      %c0_18 = arith.constant 0 : index
      %c0_19 = arith.constant 0 : index
      %19 = vector.load %arg13[%c0_18, %c0_19] : memref<1x50xf32, #tpu.memory_space<vmem>>, vector<1x50xf32>
      tpu.vector_store %arg13[%c0_18, %c0_19], %18 {strides = array<i32>} : memref<1x50xf32, #tpu.memory_space<vmem>>, vector<1x50xf32>,
    } else {
    }
    %c0 = arith.constant 0 : index
    %c0_1 = arith.constant 0 : index
    %c0_2 = arith.constant 0 : index
    %3 = vector.load %arg2[%c0, %c0_1, %c0_2] : memref<1x50x256xf32, #tpu.memory_space<vmem>>, vector<1x50x256xf32>
    %c0_3 = arith.constant 0 : index
    %c0_4 = arith.constant 0 : index
    %4 = vector.load %arg12[%c0_3, %c0_4] : memref<1x50xf32, #tpu.memory_space<vmem>>, vector<1x50xf32>
    %cst = arith.constant dense<0.000000e+00> : vector<1x50xf32>
    %5 = vector.multi_reduction <add>, %3, %cst [2] : vector<1x50x256xf32> to vector<1x50xf32>
    %6 = arith.addf %4, %5 : vector<1x50xf32>
    %c0_5 = arith.constant 0 : index
    %c0_6 = arith.constant 0 : index
    %7 = vector.load %arg12[%c0_5, %c0_6] : memref<1x50xf32, #tpu.memory_space<vmem>>, vector<1x50xf32>
    tpu.vector_store %arg12[%c0_5, %c0_6], %6 {strides = array<i32>} : memref<1x50xf32, #tpu.memory_space<vmem>>, vector<1x50xf32>,
    %c0_7 = arith.constant 0 : index
    %c0_8 = arith.constant 0 : index
    %8 = vector.load %arg13[%c0_7, %c0_8] : memref<1x50xf32, #tpu.memory_space<vmem>>, vector<1x50xf32>
    %9 = arith.mulf %3, %3 : vector<1x50x256xf32>
    %cst_9 = arith.constant dense<0.000000e+00> : vector<1x50xf32>
    %10 = vector.multi_reduction <add>, %9, %cst_9 [2] : vector<1x50x256xf32> to vector<1x50xf32>
    %11 = arith.addf %8, %10 : vector<1x50xf32>
    %c0_10 = arith.constant 0 : index
    %c0_11 = arith.constant 0 : index
    %12 = vector.load %arg13[%c0_10, %c0_11] : memref<1x50xf32, #tpu.memory_space<vmem>>, vector<1x50xf32>
    tpu.vector_store %arg13[%c0_10, %c0_11], %11 {strides = array<i32>} : memref<1x50xf32, #tpu.memory_space<vmem>>, vector<1x50xf32>,
    %c0_i32_12 = arith.constant 0 : i32
    %13 = arith.cmpi eq, %arg1, %c0_i32_12 : i32
    %14 = arith.extui %13 : i1 to i32
    %c0_i32_13 = arith.constant 0 : i32
    %15 = arith.cmpi ne, %14, %c0_i32_13 : i32
    scf.if %15 {
      %c0_14 = arith.constant 0 : index
      %c0_15 = arith.constant 0 : index
      %16 = vector.load %arg12[%c0_14, %c0_15] : memref<1x50xf32, #tpu.memory_space<vmem>>, vector<1x50xf32>
      %cst_16 = arith.constant 3.906250e-03 : f32
      %17 = vector.broadcast %cst_16 : f32 to vector<1x50xf32>
      %18 = arith.mulf %16, %17 : vector<1x50xf32>
      %c0_17 = arith.constant 0 : index
      %c0_18 = arith.constant 0 : index
      %19 = vector.load %arg13[%c0_17, %c0_18] : memref<1x50xf32, #tpu.memory_space<vmem>>, vector<1x50xf32>
      %20 = arith.mulf %18, %16 : vector<1x50xf32>
      %21 = arith.subf %19, %20 : vector<1x50xf32>
      %cst_19 = arith.constant 0.00392156886 : f32
      %22 = vector.broadcast %cst_19 : f32 to vector<1x50xf32>
      %23 = arith.mulf %21, %22 : vector<1x50xf32>
      %cst_20 = arith.constant 0.000000e+00 : f32
      %24 = vector.broadcast %cst_20 : f32 to vector<1x50xf32>
      %25 = arith.maximumf %23, %24 : vector<1x50xf32>
      %26 = math.sqrt %25 : vector<1x50xf32>
      %c0_21 = arith.constant 0 : index
      %c0_22 = arith.constant 0 : index
      %27 = vector.load %arg3[%c0_21, %c0_22] : memref<50x3xf32, #tpu.memory_space<vmem>>, vector<50x3xf32>
      %cst_23 = arith.constant dense<0.000000e+00> : vector<1x3xf32>
      %28 = tpu.matmul %18, %27, %cst_23 {dimension_numbers = #tpu.dot_dimension_numbers<[1], [0], [0], [1], [0, 0, 1, 1], [], []>} : vector<1x50xf32>, vector<50x3xf32>, vector<1x3xf32> -> vector<1x3xf32>
      %c0_24 = arith.constant 0 : index
      %c0_25 = arith.constant 0 : index
      %29 = vector.load %arg4[%c0_24, %c0_25] : memref<1x3xf32, #tpu.memory_space<vmem>>, vector<1x3xf32>
      %30 = arith.addf %28, %29 : vector<1x3xf32>
      %cst_26 = arith.constant 5.000000e-01 : f32
      %31 = vector.broadcast %cst_26 : f32 to vector<1x3xf32>
      %32 = arith.mulf %31, %30 : vector<1x3xf32>
      %cst_27 = arith.constant 4.471500e-02 : f32
      %33 = vector.broadcast %cst_27 : f32 to vector<1x3xf32>
      %34 = arith.mulf %33, %30 : vector<1x3xf32>
      %35 = arith.mulf %34, %30 : vector<1x3xf32>
      %36 = arith.mulf %35, %30 : vector<1x3xf32>
      %37 = arith.addf %30, %36 : vector<1x3xf32>
      %cst_28 = arith.constant 0.797884583 : f32
      %38 = vector.broadcast %cst_28 : f32 to vector<1x3xf32>
      %39 = arith.mulf %38, %37 : vector<1x3xf32>
      %40 = math.tanh %39 : vector<1x3xf32>
      %cst_29 = arith.constant 1.000000e+00 : f32
      %41 = vector.broadcast %cst_29 : f32 to vector<1x3xf32>
      %42 = arith.addf %41, %40 : vector<1x3xf32>
      %43 = arith.mulf %32, %42 : vector<1x3xf32>
      %c0_30 = arith.constant 0 : index
      %c0_31 = arith.constant 0 : index
      %44 = vector.load %arg5[%c0_30, %c0_31] : memref<3x50xf32, #tpu.memory_space<vmem>>, vector<3x50xf32>
      %cst_32 = arith.constant dense<0.000000e+00> : vector<1x50xf32>
      %45 = tpu.matmul %43, %44, %cst_32 {dimension_numbers = #tpu.dot_dimension_numbers<[1], [0], [0], [1], [0, 0, 1, 1], [], []>} : vector<1x3xf32>, vector<3x50xf32>, vector<1x50xf32> -> vector<1x50xf32>
      %c0_33 = arith.constant 0 : index
      %c0_34 = arith.constant 0 : index
      %46 = vector.load %arg6[%c0_33, %c0_34] : memref<1x50xf32, #tpu.memory_space<vmem>>, vector<1x50xf32>
      %47 = arith.addf %45, %46 : vector<1x50xf32>
      %48 = arith.negf %47 : vector<1x50xf32>
      %49 = math.exp %48 : vector<1x50xf32>
      %cst_35 = arith.constant 1.000000e+00 : f32
      %50 = vector.broadcast %cst_35 : f32 to vector<1x50xf32>
      %51 = arith.addf %50, %49 : vector<1x50xf32>
      %52 = arith.divf %50, %51 : vector<1x50xf32>
      %c0_36 = arith.constant 0 : index
      %c0_37 = arith.constant 0 : index
      %53 = vector.load %arg7[%c0_36, %c0_37] : memref<50x3xf32, #tpu.memory_space<vmem>>, vector<50x3xf32>
      %cst_38 = arith.constant dense<0.000000e+00> : vector<1x3xf32>
      %54 = tpu.matmul %26, %53, %cst_38 {dimension_numbers = #tpu.dot_dimension_numbers<[1], [0], [0], [1], [0, 0, 1, 1], [], []>} : vector<1x50xf32>, vector<50x3xf32>, vector<1x3xf32> -> vector<1x3xf32>
      %c0_39 = arith.constant 0 : index
      %c0_40 = arith.constant 0 : index
      %55 = vector.load %arg8[%c0_39, %c0_40] : memref<1x3xf32, #tpu.memory_space<vmem>>, vector<1x3xf32>
      %56 = arith.addf %54, %55 : vector<1x3xf32>
      %cst_41 = arith.constant 5.000000e-01 : f32
      %57 = vector.broadcast %cst_41 : f32 to vector<1x3xf32>
      %58 = arith.mulf %57, %56 : vector<1x3xf32>
      %cst_42 = arith.constant 4.471500e-02 : f32
      %59 = vector.broadcast %cst_42 : f32 to vector<1x3xf32>
      %60 = arith.mulf %59, %56 : vector<1x3xf32>
      %61 = arith.mulf %60, %56 : vector<1x3xf32>
      %62 = arith.mulf %61, %56 : vector<1x3xf32>
      %63 = arith.addf %56, %62 : vector<1x3xf32>
      %cst_43 = arith.constant 0.797884583 : f32
      %64 = vector.broadcast %cst_43 : f32 to vector<1x3xf32>
      %65 = arith.mulf %64, %63 : vector<1x3xf32>
      %66 = math.tanh %65 : vector<1x3xf32>
      %cst_44 = arith.constant 1.000000e+00 : f32
      %67 = vector.broadcast %cst_44 : f32 to vector<1x3xf32>
      %68 = arith.addf %67, %66 : vector<1x3xf32>
      %69 = arith.mulf %58, %68 : vector<1x3xf32>
      %c0_45 = arith.constant 0 : index
      %c0_46 = arith.constant 0 : index
      %70 = vector.load %arg9[%c0_45, %c0_46] : memref<3x50xf32, #tpu.memory_space<vmem>>, vector<3x50xf32>
      %cst_47 = arith.constant dense<0.000000e+00> : vector<1x50xf32>
      %71 = tpu.matmul %69, %70, %cst_47 {dimension_numbers = #tpu.dot_dimension_numbers<[1], [0], [0], [1], [0, 0, 1, 1], [], []>} : vector<1x3xf32>, vector<3x50xf32>, vector<1x50xf32> -> vector<1x50xf32>
      %c0_48 = arith.constant 0 : index
      %c0_49 = arith.constant 0 : index
      %72 = vector.load %arg10[%c0_48, %c0_49] : memref<1x50xf32, #tpu.memory_space<vmem>>, vector<1x50xf32>
      %73 = arith.addf %71, %72 : vector<1x50xf32>
      %74 = arith.negf %73 : vector<1x50xf32>
      %75 = math.exp %74 : vector<1x50xf32>
      %cst_50 = arith.constant 1.000000e+00 : f32
      %76 = vector.broadcast %cst_50 : f32 to vector<1x50xf32>
      %77 = arith.addf %76, %75 : vector<1x50xf32>
      %78 = arith.divf %76, %77 : vector<1x50xf32>
      %79 = arith.addf %52, %78 : vector<1x50xf32>
      %cst_51 = arith.constant 5.000000e-01 : f32
      %80 = vector.broadcast %cst_51 : f32 to vector<1x50xf32>
      %81 = arith.mulf %80, %79 : vector<1x50xf32>
      %82 = vector.shape_cast %81 : vector<1x50xf32> to vector<1x1x50xf32>
      %c0_52 = arith.constant 0 : index
      %c0_53 = arith.constant 0 : index
      %c0_54 = arith.constant 0 : index
      %83 = vector.load %arg11[%c0_52, %c0_53, %c0_54] : memref<1x1x50xf32, #tpu.memory_space<vmem>>, vector<1x1x50xf32>
      tpu.vector_store %arg11[%c0_52, %c0_53, %c0_54], %82 {strides = array<i32>} : memref<1x1x50xf32, #tpu.memory_space<vmem>>, vector<1x1x50xf32>,
    } else {
    }
    return
  }
  func.func @transform_0(%arg0: i32, %arg1: i32) -> (i32, i32, i32) {
    %c0_i32 = arith.constant 0 : i32
    %c0_i32_0 = arith.constant 0 : i32
    return %arg0, %c0_i32, %arg1 : i32, i32, i32
  }
  func.func @transform_1(%arg0: i32, %arg1: i32) -> (i32, i32) {
    %c0_i32 = arith.constant 0 : i32
    %c0_i32_0 = arith.constant 0 : i32
    %c0_i32_1 = arith.constant 0 : i32
    return %c0_i32, %c0_i32_0 : i32, i32
  }
  func.func @transform_2(%arg0: i32, %arg1: i32) -> (i32, i32) {
    %c0_i32 = arith.constant 0 : i32
    %c0_i32_0 = arith.constant 0 : i32
    %c0_i32_1 = arith.constant 0 : i32
    return %c0_i32, %c0_i32_0 : i32, i32
  }
  func.func @transform_3(%arg0: i32, %arg1: i32) -> (i32, i32) {
    %c0_i32 = arith.constant 0 : i32
    %c0_i32_0 = arith.constant 0 : i32
    %c0_i32_1 = arith.constant 0 : i32
    return %c0_i32, %c0_i32_0 : i32, i32
  }
  func.func @transform_4(%arg0: i32, %arg1: i32) -> (i32, i32) {
    %c0_i32 = arith.constant 0 : i32
    %c0_i32_0 = arith.constant 0 : i32
    %c0_i32_1 = arith.constant 0 : i32
    return %c0_i32, %c0_i32_0 : i32, i32
  }
  func.func @transform_5(%arg0: i32, %arg1: i32) -> (i32, i32) {
    %c0_i32 = arith.constant 0 : i32
    %c0_i32_0 = arith.constant 0 : i32
    %c0_i32_1 = arith.constant 0 : i32
    return %c0_i32, %c0_i32_0 : i32, i32
  }
  func.func @transform_6(%arg0: i32, %arg1: i32) -> (i32, i32) {
    %c0_i32 = arith.constant 0 : i32
    %c0_i32_0 = arith.constant 0 : i32
    %c0_i32_1 = arith.constant 0 : i32
    return %c0_i32, %c0_i32_0 : i32, i32
  }
  func.func @transform_7(%arg0: i32, %arg1: i32) -> (i32, i32) {
    %c0_i32 = arith.constant 0 : i32
    %c0_i32_0 = arith.constant 0 : i32
    %c0_i32_1 = arith.constant 0 : i32
    return %c0_i32, %c0_i32_0 : i32, i32
  }
  func.func @transform_8(%arg0: i32, %arg1: i32) -> (i32, i32) {
    %c0_i32 = arith.constant 0 : i32
    %c0_i32_0 = arith.constant 0 : i32
    %c0_i32_1 = arith.constant 0 : i32
    return %c0_i32, %c0_i32_0 : i32, i32
  }
  func.func @transform_9(%arg0: i32, %arg1: i32) -> (i32, i32, i32) {
    %c0_i32 = arith.constant 0 : i32
    %c0_i32_0 = arith.constant 0 : i32
    %c0_i32_1 = arith.constant 0 : i32
    return %arg0, %c0_i32, %c0_i32_0 : i32, i32, i32
  }
}

</mosaic_0001>

<bundles_post_ra>
// kernel: tpu_custom_call.1
= control target key start
LH: loop header
LB: loop body
LE: loop exit
PB: predicated region body
PF: predicated region fallthrough
CT: control target
= control target key end

     0   :  { %14 = vsyncpa [#allocation5], 0  ;;  %s2925_s0 = inlined_call_operand.vmem [shape: f32[2,50,256], index: 0, kind: input, shape index: {}]   ;;  %s2926_s1 = inlined_call_operand.vmem [shape: f32[50,3], index: 1, kind: input, shape index: {}]   ;;  %s2927_s2 = inlined_call_operand.vmem [shape: f32[1,3], index: 2, kind: input, shape index: {}]   ;;  %s2928_s3 = inlined_call_operand.vmem [shape: f32[3,50], index: 3, kind: input, shape index: {}]   ;;  %s2929_s4 = inlined_call_operand.vmem [shape: f32[1,50], index: 4, kind: input, shape index: {}]   ;;  %s2930_s5 = inlined_call_operand.vmem [shape: f32[50,3], index: 5, kind: input, shape index: {}]   ;;  %s2931_s6 = inlined_call_operand.vmem [shape: f32[1,3], index: 6, kind: input, shape index: {}]   ;;  %s2932_s7 = inlined_call_operand.vmem [shape: f32[3,50], index: 7, kind: input, shape index: {}]   ;;  %s2933_s8 = inlined_call_operand.vmem [shape: f32[1,50], index: 8, kind: input, shape index: {}]   ;;  %s2934_s9 = inlined_call_operand.hbm [shape: f32[2,1,50], index: 9, kind: output, shape index: {}]  }
   0x1   :  { %16 = vsyncpa [#allocation5 + $0x1], 0  ;;  %s2406_s30 = smov 0   ;;  %s2408_s10 = smov 0  }
   0x2   :  { %s2410_s11 = smov 0   ;;  %s2412_s12 = smov 0  }
   0x3   :  { %s2414_s13 = smov 0   ;;  %s2416_s14 = smov 0  }
   0x4 LB: > { %s2092_s15 = sadd.s32 4294967295, %s2348_s14   ;;  %s2093_s16 = sadd.s32 4294967294, %s2348_s14   ;;  %s2348_s14 = sphi %s2416_s14, %s22_s14   ;;  %s2344_s13 = sphi %s2414_s13, %s2941_s13   ;;  %s2340_s12 = sphi %s2412_s12, %s2940_s12   ;;  %s2336_s11 = sphi %s2410_s11, %s2939_s11   ;;  %s2332_s10 = sphi %s2408_s10, %s2938_s10   ;;  %s2328_s30 = sphi %s2406_s30, %s2937_s30  }
   0x5   : > { %s34_s17 = sadd.s32 1, %s2344_s13  ;;  %s237_s18 = sadd.s32 1, %s2336_s11 }
   0x6   : > { %p36_p0 = scmp.ge.s32.totalorder %s34_s17, 2  ;;  %p247_p1 = scmp.ne.s32.totalorder %s2336_s11, %s2332_s10 }
   0x7   : > { %p248_p2 = scmp.eq.s32.totalorder %s2092_s15, 1  ;;  %p253_p3 = scmp.ne.s32.totalorder %s2332_s10, %s2328_s30 }
   0x8   : > { %s2943_s17 = smov (%p36_p0, %s34_s17), 0  ;;  %p254_p5 = scmp.eq.s32.totalorder %s2093_s16, 1 }
   0x9   : > { %p2446_p4 = por %p248_p2, %p247_p1  ;;  %s234_s20 = ssub.s32 %s2344_s13, %s2943_s17 }
   0xa   : > { %p2096_p6 = scmp.ge.s32.totalorder %s2348_s14, 1  ;;  %p235_p7 = scmp.eq.s32.totalorder %s234_s20, 0 }
   0xb   : > { %p2453_p8 = por %p254_p5, %p253_p3  ;;  %p309_p9 = scmp.lt.s32.totalorder %s2348_s14, 3 }
   0xc   : > { %s2459_s22 = scalar_select %p235_p7, %s2336_s11, %s237_s18  }
   0xd   : > { %p310_p10 = pnand %p2096_p6, %p309_p9 }
   0xe   : > { %p349_p11 = scmp.lt.s32.totalorder (!%p310_p10), %s2340_s12, 1  ;;  %vm398_vm0 = vcmask (!%p310_p10), 1041408   ;;  %v2350_v23 = vmov (!%p310_p10), 0   ;;  %v411_v33 = vlaneseq (!%p310_p10)  ;;  %v2351_v34 = vmov (!%p310_p10), 1966171168   ;;  %s2108_s25 = sshll.u32 (!%p310_p10), %s2340_s12, 4 }
   0xf   : > { %313 = sbr.rel (%p310_p10) target bundleno = 1112 (0x458), region = 56  ;;  %2254 = vset.pattern.permute.xlu1 (!%p310_p10), %v2350_v23  ;;  %2255 = vset.pattern.permute.xlu0 (!%p310_p10), %v2350_v23  ;;  %v616_v35 = vunpack.c.l.s4 (!%p310_p10), %v2351_v34  ;;  %vm362_vm1 = vcmask (!%p310_p10), 401408   ;;  %vm2354_vm2 = vmmov (!%p310_p10), 0   ;;  %vm952_vm3 = vcmask (!%p310_p10), 130112   ;;  %s2877_s15 = scalar_lea.hbm (!%p310_p10), %s2934_s9, %s2108_s25 }
  0x10   : > { %v2499_v36 = vshrl.u32 (!%p310_p10), %v411_v33, 7  ;;  %vm959_vm4 = vcmask (!%p310_p10), 195712   ;;  %vm966_vm5 = vcmask (!%p310_p10), 261312   ;;  %vm973_vm6 = vcmask (!%p310_p10), 326912  }
  0x11   : > { %v617_v37 = vunpack.c.0.s8 (!%p310_p10), %v616_v35  ;;  %vm980_vm7 = vcmask (!%p310_p10), 392512   ;;  %vm987_vm8 = vcmask (!%p310_p10), 458112   ;;  %vm1658_vm9 = vcmask (!%p310_p10), 408576  }
  0x12   : > { %v2502_v38 = vsub.s32 (!%p310_p10), 0, %v2499_v36  ;;  %v2505_v39 = vsub.s32 (!%p310_p10), 1, %v2499_v36  ;;  %v2508_v40 = vsub.s32 (!%p310_p10), 2, %v2499_v36  ;;  %v2511_v41 = vsub.s32 (!%p310_p10), 3, %v2499_v36 }
  0x13   : > { %v2514_v42 = vsub.s32 (!%p310_p10), 4, %v2499_v36  ;;  %v2517_v43 = vsub.s32 (!%p310_p10), 5, %v2499_v36  ;;  %v2520_v44 = vsub.s32 (!%p310_p10), 6, %v2499_v36  ;;  %v2523_v45 = vsub.s32 (!%p310_p10), 7, %v2499_v36 }
  0x14   : > { %v2526_v47 = vsub.s32 (!%p310_p10), %v617_v37, %v2499_v36  ;;  %vm1750_vm10 = vcmask (!%p310_p10), 1042432   ;;  %vm1746_vm11 = vcmask (!%p310_p10), 23552  }
  0x16   : > { %s350_s23 = scalar_select %p349_p11, %s2340_s12, 1 }
  0x17   : > { %s2355_s12 = smov [#allocation4]  }
  0x18   : > { %s2193_s24 = smul.u32 112, %s350_s23  ;;  %s2274_s20 = sshll.u32 %s2355_s12, 4  ;;  %s2275_s20 = int_to_ptr.vmem [resolvable:$false] %s2274_s20 }
  0x19   : > { %s2276_s23 = scalar_lea.vmem %s2275_s20, 32 }
  0x1a   : > { %s356_s27 = scalar_lea.vmem %s2925_s0, %s2193_s24  ;;  %s346_s24 = sand.u32 1, %s2332_s10  }
  0x1b   : > { %v365_v0 = vld [vmem:[%s356_s27] sm:$0xff]  ;;  %v366_v1 = vld [vmem:[%s356_s27 + $0x8] sm:$0xff]  ;;  %v367_v5 = vld [vmem:[%s356_s27 + $0x10] sm:$0xff]  ;;  %s347_s26 = scalar_lea.vmem [#allocation4], %s346_s24  ;;  %s2011_s16 = scalar_lea.sflag [#allocation5], %s346_s24 }
  0x1c   : > { %v369_v2 = vld [vmem:[%s356_s27 + $0x20] sm:$0xff]  ;;  %v380_v3 = vadd.f32 %v366_v1, %v365_v0  ;;  %v370_v4 = vld [vmem:[%s356_s27 + $0x28] sm:$0xff]  ;;  %v368_v6 = vld [vmem:[%s356_s27 + $0x18] sm:$0xff]  ;;  %v1010_v24 = vmul.f32 %v367_v5, %v367_v5  ;;  %v1008_v27 = vmul.f32 %v365_v0, %v365_v0  ;;  %v1009_v28 = vmul.f32 %v366_v1, %v366_v1 }
  0x1d   : > { %v386_v7 = vadd.f32 %v370_v4, %v369_v2  ;;  %v2466_v8 = vld [vmem:[%s356_s27 + $0x30] sm:$0xff]  ;;  %v2468_v9 = vld [vmem:[%s356_s27 + $0x38] sm:$0xff]  ;;  %v383_v10 = vadd.f32 %v368_v6, %v367_v5  ;;  %v2472_v12 = vld [vmem:[%s356_s27 + $0x40] sm:$0xff]  ;;  %v1011_v25 = vmul.f32 %v368_v6, %v368_v6  ;;  %v1012_v30 = vmul.f32 %v369_v2, %v369_v2 }
  0x1e   : > { %381 = vadd.xlane.f32.xlu0 %v380_v3  ;;  %v389_v11 = vadd.f32 %v2468_v9, %v2466_v8  ;;  %v2474_v13 = vld [vmem:[%s356_s27 + $0x48] sm:$0xff]  ;;  %v2476_v14 = vld [vmem:[%s356_s27 + $0x50] sm:$0xff]  ;;  %v2478_v15 = vld [vmem:[%s356_s27 + $0x58] sm:$0xff]  ;;  %v2494_v29 = vadd.f32 %v1009_v28, %v1008_v27  ;;  %v1013_v31 = vmul.f32 %v370_v4, %v370_v4 }
  0x1f   : > { %387 = vadd.xlane.f32.xlu1 %v386_v7  ;;  %v2480_v16 = vld [vmem:[%s356_s27 + $0x60] sm:$0x3]  ;;  %v2482_v17 = vld [vmem:[%s356_s27 + $0x68] sm:$0x3]  ;;  %v392_v18 = vadd.f32 %v2474_v13, %v2472_v12  ;;  %v395_v19 = vadd.f32 %v2478_v15, %v2476_v14  ;;  %v2492_v26 = vadd.f32 %v1011_v25, %v1010_v24  ;;  %s2023_s27 = sshll.u32 %s347_s26, 4  ;;  %s2879_s27 = int_to_ptr.vmem [resolvable:$true] %s2023_s27 }
  0x20   : > { %v399_v20 = vsel %vm398_vm0, %v2480_v16, 0.0  ;;  %v400_v21 = vsel %vm398_vm0, %v2482_v17, 0.0  ;;  %v2496_v32 = vadd.f32 %v1013_v31, %v1012_v30  ;;  %s2270_s18 = scalar_lea.vmem %s2879_s27, 16  ;;  %p2277_p1 = scmp.lt.s32.totalorder %s2879_s27, %s2275_s20 }
  0x21   : > { %v401_v22 = vadd.f32 %v400_v21, %v399_v20  ;;  %p2271_p12 = scmp.ne.s32.totalorder %s2879_s27, %s2270_s18  ;;  %p2278_p2 = scmp.lt.s32.totalorder %s2276_s23, %s2270_s18 }
  0x22   : > { %384 = vadd.xlane.f32.xlu0 %v383_v10 }
  0x23   : > { %390 = vadd.xlane.f32.xlu1 %v389_v11  ;;  %p2272_p13 = pnand %p2271_p12, %p2446_p4  ;;  %p2279_p3 = por %p2278_p2, %p2277_p1 }
  0x25   : > { %p2273_p0 = pneg %p2272_p13 }
  0x26   : > { %393 = vadd.xlane.f32.xlu0 %v392_v18 }
  0x27   : > { %396 = vadd.xlane.f32.xlu1 %v395_v19  ;;  %p2280_p5 = pnand %p2279_p3, %p2273_p0 }
  0x2a   : > { %402 = vadd.xlane.f32.xlu0 %v401_v22 }
  0xab   : > { %v382_v46 = vpop.xlane.xlu0 %381 }
  0xac   : > { %v388_v48 = vpop.xlane.xlu1 %387  ;;  %v414_v49 = vrot.slane %v382_v46, %v2502_v38  ;;  %v418_v50 = vrot.slane %v382_v46, %v2505_v39  ;;  %v422_v51 = vrot.slane %v382_v46, %v2508_v40  ;;  %v426_v52 = vrot.slane %v382_v46, %v2511_v41 }
  0xad   : > { %v430_v53 = vrot.slane %v382_v46, %v2514_v42  ;;  %v434_v54 = vrot.slane %v382_v46, %v2517_v43  ;;  %v438_v55 = vrot.slane %v382_v46, %v2520_v44  ;;  %v442_v56 = vrot.slane %v382_v46, %v2523_v45 }
  0xae   : > { %v611_v57 = vcombine.low %v414_v49, %v418_v50  ;;  %v612_v58 = vcombine.low %v422_v51, %v426_v52  ;;  %v478_v59 = vrot.slane %v388_v48, %v2502_v38  ;;  %v482_v60 = vrot.slane %v388_v48, %v2505_v39 }
  0xaf   : > { %v613_v61 = vcombine.low %v430_v53, %v434_v54  ;;  %v614_v62 = vcombine.low %v438_v55, %v442_v56  ;;  %v486_v63 = vrot.slane %v388_v48, %v2508_v40  ;;  %v490_v0 = vrot.slane %v388_v48, %v2511_v41  ;;  %v385_v1 = vpop.xlane.xlu0 %384 }
  0xb0   : > { %v621_v2 = vrot.slane %v611_v57, %v2526_v47  ;;  %v628_v3 = vrot.slane %v612_v58, %v2526_v47  ;;  %v494_v4 = vrot.slane %v388_v48, %v2514_v42  ;;  %v498_v5 = vrot.slane %v388_v48, %v2517_v43  ;;  %v391_v34 = vpop.xlane.xlu1 %390 }
  0xb1   : > { %v635_v6 = vrot.slane %v613_v61, %v2526_v47  ;;  %v642_v7 = vrot.slane %v614_v62, %v2526_v47  ;;  %v502_v10 = vrot.slane %v388_v48, %v2520_v44  ;;  %v506_v11 = vrot.slane %v388_v48, %v2523_v45 }
  0xb2   : > { %v643_v18 = vcombine.low %v621_v2, %v628_v3  ;;  %v709_v19 = vcombine.low %v478_v59, %v482_v60  ;;  %v710_v20 = vcombine.low %v486_v63, %v490_v0  ;;  %v711_v21 = vcombine.low %v494_v4, %v498_v5 }
  0xb3   : > { %v644_v22 = vcombine.low %v635_v6, %v642_v7  ;;  %v712_v23 = vcombine.low %v502_v10, %v506_v11  ;;  %v446_v24 = vrot.slane %v385_v1, %v2502_v38  ;;  %v450_v25 = vrot.slane %v385_v1, %v2505_v39  ;;  %v394_v5 = vpop.xlane.xlu0 %393 }
  0xb4   : > { %v651_v27 = vrot.slane %v643_v18, %v2526_v47  ;;  %v719_v28 = vrot.slane %v709_v19, %v2526_v47  ;;  %v726_v30 = vrot.slane %v710_v20, %v2526_v47  ;;  %v733_v31 = vrot.slane %v711_v21, %v2526_v47 }
  0xb5   : > { %v658_v35 = vrot.slane %v644_v22, %v2526_v47  ;;  %v740_v37 = vrot.slane %v712_v23, %v2526_v47  ;;  %v454_v46 = vrot.slane %v385_v1, %v2508_v40  ;;  %v458_v48 = vrot.slane %v385_v1, %v2511_v41 }
  0xb6   : > { %v741_v49 = vcombine.low %v719_v28, %v726_v30  ;;  %v462_v50 = vrot.slane %v385_v1, %v2514_v42  ;;  %v466_v51 = vrot.slane %v385_v1, %v2517_v43  ;;  %v470_v52 = vrot.slane %v385_v1, %v2520_v44 }
  0xb7   : > { %v659_v53 = vcombine.low %v651_v27, %v658_v35  ;;  %v742_v54 = vcombine.low %v733_v31, %v740_v37  ;;  %v474_v55 = vrot.slane %v385_v1, %v2523_v45  ;;  %v660_v56 = vcombine.low %v446_v24, %v450_v25  ;;  %v403_v37 = vpop.xlane.xlu0 %402 }
  0xb8   : > { %v749_v57 = vrot.slane %v741_v49, %v2526_v47  ;;  %v661_v58 = vcombine.low %v454_v46, %v458_v48  ;;  %v662_v59 = vcombine.low %v462_v50, %v466_v51  ;;  %v510_v60 = vrot.slane %v391_v34, %v2502_v38  ;;  %v397_v50 = vpop.xlane.xlu1 %396 }
  0xb9   : > { %921 = vperm.xlu1 %2254, %v659_v53   ;;  %v756_v61 = vrot.slane %v742_v54, %v2526_v47  ;;  %v663_v62 = vcombine.low %v470_v52, %v474_v55  ;;  %v670_v63 = vrot.slane %v660_v56, %v2526_v47  ;;  %v514_v0 = vrot.slane %v391_v34, %v2505_v39 }
  0xba   : > { %v677_v2 = vrot.slane %v661_v58, %v2526_v47  ;;  %v684_v3 = vrot.slane %v662_v59, %v2526_v47  ;;  %v518_v1 = vrot.slane %v391_v34, %v2508_v40  ;;  %v522_v4 = vrot.slane %v391_v34, %v2511_v41 }
  0xbb   : > { %v757_v6 = vcombine.low %v749_v57, %v756_v61  ;;  %v691_v7 = vrot.slane %v663_v62, %v2526_v47  ;;  %v526_v10 = vrot.slane %v391_v34, %v2514_v42  ;;  %v530_v11 = vrot.slane %v391_v34, %v2517_v43 }
  0xbc   : > { %v692_v18 = vcombine.low %v670_v63, %v677_v2  ;;  %v534_v19 = vrot.slane %v391_v34, %v2520_v44  ;;  %v538_v20 = vrot.slane %v391_v34, %v2523_v45  ;;  %v758_v21 = vcombine.low %v510_v60, %v514_v0 }
  0xbd   : > { %927 = vperm.xlu1 %2254, %v757_v6   ;;  %v693_v22 = vcombine.low %v684_v3, %v691_v7  ;;  %v759_v23 = vcombine.low %v518_v1, %v522_v4  ;;  %v760_v24 = vcombine.low %v526_v10, %v530_v11  ;;  %v542_v46 = vrot.slane %v394_v5, %v2502_v38 }
  0xbe   : > { %v700_v25 = vrot.slane %v692_v18, %v2526_v47  ;;  %v761_v27 = vcombine.low %v534_v19, %v538_v20  ;;  %v768_v28 = vrot.slane %v758_v21, %v2526_v47  ;;  %v546_v48 = vrot.slane %v394_v5, %v2505_v39 }
  0xbf   : > { %v707_v30 = vrot.slane %v693_v22, %v2526_v47  ;;  %v775_v31 = vrot.slane %v759_v23, %v2526_v47  ;;  %v782_v35 = vrot.slane %v760_v24, %v2526_v47  ;;  %v550_v49 = vrot.slane %v394_v5, %v2508_v40 }
  0xc0   : > { %v789_v34 = vrot.slane %v761_v27, %v2526_v47  ;;  %v554_v53 = vrot.slane %v394_v5, %v2511_v41  ;;  %v558_v54 = vrot.slane %v394_v5, %v2514_v42  ;;  %v606_v56 = vrot.slane %v403_v37, %v2502_v38 }
  0xc1   : > { %v708_v51 = vcombine.low %v700_v25, %v707_v30  ;;  %v790_v52 = vcombine.low %v768_v28, %v775_v31  ;;  %v562_v57 = vrot.slane %v394_v5, %v2517_v43  ;;  %v566_v58 = vrot.slane %v394_v5, %v2520_v44 }
  0xc2   : > { %v791_v55 = vcombine.low %v782_v35, %v789_v34  ;;  %v570_v60 = vrot.slane %v394_v5, %v2523_v45  ;;  %v807_v61 = vcombine.low %v542_v46, %v546_v48  ;;  %v808_v62 = vcombine.low %v550_v49, %v554_v53 }
  0xc3   : > { %924 = vperm.xlu0 %2255, %v708_v51   ;;  %v798_v59 = vrot.slane %v790_v52, %v2526_v47  ;;  %v809_v0 = vcombine.low %v558_v54, %v562_v57  ;;  %v574_v2 = vrot.slane %v397_v50, %v2502_v38  ;;  %v578_v3 = vrot.slane %v397_v50, %v2505_v39 }
  0xc4   : > { %v805_v63 = vrot.slane %v791_v55, %v2526_v47  ;;  %v810_v1 = vcombine.low %v566_v58, %v570_v60  ;;  %v817_v4 = vrot.slane %v807_v61, %v2526_v47  ;;  %v824_v6 = vrot.slane %v808_v62, %v2526_v47  ;;  %v1651_v61 = vld [vmem:[%s2926_s1 + $0x8] sm:$0xff] }
  0xc5   : > { %v582_v7 = vrot.slane %v397_v50, %v2508_v40  ;;  %v831_v11 = vrot.slane %v809_v0, %v2526_v47  ;;  %v586_v5 = vrot.slane %v397_v50, %v2511_v41  ;;  %v590_v18 = vrot.slane %v397_v50, %v2514_v42 }
  0xc6   : > { %v806_v10 = vcombine.low %v798_v59, %v805_v63  ;;  %v838_v19 = vrot.slane %v810_v1, %v2526_v47  ;;  %v839_v20 = vcombine.low %v817_v4, %v824_v6  ;;  %v594_v21 = vrot.slane %v397_v50, %v2517_v43  ;;  %v1652_v4 = vld [vmem:[%s2926_s1 + $0x10] sm:$0xff] }
  0xc7   : > { %v598_v22 = vrot.slane %v397_v50, %v2520_v44  ;;  %v610_v23 = vrot.slane %v403_v37, %v2505_v39  ;;  %v602_v24 = vrot.slane %v397_v50, %v2523_v45  ;;  %v856_v25 = vcombine.low %v574_v2, %v578_v3 }
  0xc8   : > { %930 = vperm.xlu1 %2254, %v806_v10   ;;  %v857_v27 = vcombine.low %v582_v7, %v586_v5  ;;  %v840_v28 = vcombine.low %v831_v11, %v838_v19  ;;  %v847_v30 = vrot.slane %v839_v20, %v2526_v47  ;;  %v858_v31 = vcombine.low %v590_v18, %v594_v21 }
  0xc9   : > { %v859_v35 = vcombine.low %v598_v22, %v602_v24  ;;  %v866_v46 = vrot.slane %v856_v25, %v2526_v47  ;;  %v905_v51 = vcombine.low %v606_v56, %v610_v23  ;;  %v2352_v60 = vmov 0.0   ;;  %v1650_v56 = vld [vmem:[%s2926_s1] sm:$0xff] }
  0xca   : > { %v873_v34 = vrot.slane %v857_v27, %v2526_v47  ;;  %v854_v48 = vrot.slane %v840_v28, %v2526_v47  ;;  %v880_v49 = vrot.slane %v858_v31, %v2526_v47  ;;  %363 = vst.msk [vmem:[#allocation2] sm:$0x1] %vm362_vm1, %v2352_v60  ;;  %364 = vst.msk [vmem:[#allocation3] sm:$0x1] %vm362_vm1, %v2352_v60  ;;  %2148 = vmatprep.subr.mxu1 %v2352_v60  ;;  %v2353_v63 = vmov 0.0|0.0  }
  0xcb   : > { %v887_v37 = vrot.slane %v859_v35, %v2526_v47  ;;  %v912_v55 = vrot.slane %v905_v51, %v2526_v47  ;;  %v2176_v62 = vpack.c.bf16 %v1651_v61, %v1650_v56  ;;  %2175 = vmatprep.subr.bf16.mxu0 %v2353_v63  ;;  %v1016_v0 = vmul.f32 %v2472_v12, %v2472_v12  ;;  %v1653_v12 = vld [vmem:[%s2926_s1 + $0x18] sm:$0xff] }
  0xcc   : > { %v888_v52 = vcombine.low %v866_v46, %v873_v34  ;;  %v855_v50 = vcombine.low %v847_v30, %v854_v48  ;;  %v1017_v2 = vmul.f32 %v2474_v13, %v2474_v13  ;;  %v1020_v3 = vmul.f32 %v2480_v16, %v2480_v16  ;;  %v1654_v13 = vld [vmem:[%s2926_s1 + $0x20] sm:$0xff]  ;;  %v1655_v16 = vld [vmem:[%s2926_s1 + $0x28] sm:$0xff]  ;;  %2145 = vmatprep.mubr.msk.f32.mxu0 %vm2354_vm2, %v2352_v60 }
  0xcd   : > { %v889_v53 = vcombine.low %v880_v49, %v887_v37  ;;  %v919_v59 = vrot.slane %v912_v55, %v2526_v47  ;;  %2177 = vmatpush3.bf16.msra.mxu0 %v2176_v62  ;;  %v1021_v1 = vmul.f32 %v2482_v17, %v2482_v17  ;;  %v2179_v6 = vpack.c.bf16 %v1653_v12, %v1652_v4 }
  0xce   : > { %v896_v54 = vrot.slane %v888_v52, %v2526_v47  ;;  %933 = vperm.xlu1 %2254, %v855_v50   ;;  %2178 = vmatprep.subr.bf16.mxu0 %v2353_v63  ;;  %v1034_v17 = vadd.f32 %v1017_v2, %v1016_v0  ;;  %v2182_v7 = vpack.c.bf16 %v1655_v16, %v1654_v13  ;;  %v1040_v10 = vsel %vm398_vm0, %v1020_v3, 0.0 }
  0xcf   : > { %v903_v57 = vrot.slane %v889_v53, %v2526_v47  ;;  %v1041_v11 = vsel %vm398_vm0, %v1021_v1, 0.0  ;;  %2150 = vmatprep.mubr.msk.f32.mxu1 %vm2354_vm2, %v2352_v60  ;;  %v1014_v18 = vmul.f32 %v2466_v8, %v2466_v8  ;;  %v1015_v19 = vmul.f32 %v2468_v9, %v2468_v9 }
  0xd0   : > { %v1042_v5 = vadd.f32 %v1041_v11, %v1040_v10  ;;  %v1018_v21 = vmul.f32 %v2476_v14, %v2476_v14  ;;  %v1019_v22 = vmul.f32 %v2478_v15, %v2478_v15  ;;  %v942_v25 = vand.u32 127, %v411_v33 }
  0xd1   : > { %v904_v58 = vcombine.low %v896_v54, %v903_v57  ;;  %2180 = vmatpush3.bf16.msra.mxu0 %v2179_v6  ;;  %v1031_v20 = vadd.f32 %v1015_v19, %v1014_v18  ;;  %v379_v1 = vld [vmem:[#allocation2] sm:$0x1] }
  0xd2   : > { %2181 = vmatprep.subr.bf16.mxu0 %v2353_v63  ;;  %v1037_v23 = vadd.f32 %v1019_v22, %v1018_v21  ;;  %v947_v8 = vadd.s32 4294967288, %v942_v25  ;;  %v954_v28 = vadd.s32 4294967280, %v942_v25  ;;  %v968_v31 = vadd.s32 4294967264, %v942_v25 }
  0xd3   : > { %936 = vperm.xlu1 %2254, %v904_v58   ;;  %v2678_v14 = vsub.s32 %v942_v25, %v2499_v36  ;;  %v975_v15 = vadd.s32 4294967256, %v942_v25  ;;  %v982_v49 = vadd.s32 4294967248, %v942_v25 }
  0xd4   : > { %v2675_v9 = vsub.s32 %v947_v8, %v2499_v36  ;;  %v2681_v35 = vsub.s32 %v954_v28, %v2499_v36  ;;  %v2688_v48 = vsub.s32 %v968_v31, %v2499_v36 }
  0xd5   : > { %2183 = vmatpush3.bf16.msra.mxu0 %v2182_v7  ;;  %v2692_v37 = vsub.s32 %v975_v15, %v2499_v36  ;;  %v2699_v57 = vsub.s32 %v982_v49, %v2499_v36 }
  0xd6   : > { %2143 = vmatprep.subr.mxu0 %v2352_v60 }
  0xd7   : > { %939 = vperm.xlu1 %2254, %v919_v59  }
  0xe2   : > { %1026 = vadd.xlane.f32.xlu0 %v2492_v26  ;;  %v1656_v26 = vld [vmem:[%s2926_s1 + $0x30] sm:$0x3] }
  0xe3   : > { %2144 = vmatpush3.msk.msra.mxu0 %vm398_vm0, %v1656_v26 }
  0xe4   : > { %2170 = vmatprep.subr.mxu0 %v2352_v60 }
  0xe6   : > { %1035 = vadd.xlane.f32.xlu0 %v1034_v17 }
  0xea   : > { %1043 = vadd.xlane.f32.xlu0 %v1042_v5 }
  0xfb   : > { %1023 = vadd.xlane.f32.xlu1 %v2494_v29 }
  0xff   : > { %1029 = vadd.xlane.f32.xlu1 %v2496_v32  ;;  %v961_v32 = vadd.s32 4294967272, %v942_v25 }
 0x101   : > { %v2685_v33 = vsub.s32 %v961_v32, %v2499_v36 }
 0x103   : > { %1032 = vadd.xlane.f32.xlu1 %v1031_v20 }
 0x107   : > { %1038 = vadd.xlane.f32.xlu1 %v1037_v23 }
 0x138   : > { %v922_v24 = vpop.permute.xlu1 %921 }
 0x139   : > { %v946_v51 = vrot.slane %v922_v24, %v2678_v14 }
 0x13c   : > { %v928_v29 = vpop.permute.xlu1 %927 }
 0x13d   : > { %v958_v52 = vrot.slane %v928_v29, %v2681_v35 }
 0x142   : > { %v925_v30 = vpop.permute.xlu0 %924 }
 0x143   : > { %v951_v34 = vrot.slane %v925_v30, %v2675_v9 }
 0x145   : > { %v953_v50 = vsel %vm952_vm3, %v951_v34, %v946_v51 }
 0x146   : > { %v960_v59 = vsel %vm959_vm4, %v958_v52, %v953_v50 }
 0x147   : > { %v931_v27 = vpop.permute.xlu1 %930 }
 0x148   : > { %v965_v53 = vrot.slane %v931_v27, %v2685_v33 }
 0x14a   : > { %v967_v56 = vsel %vm966_vm5, %v965_v53, %v960_v59 }
 0x14d   : > { %v934_v46 = vpop.permute.xlu1 %933 }
 0x14e   : > { %v972_v55 = vrot.slane %v934_v46, %v2688_v48 }
 0x150   : > { %v974_v62 = vsel %vm973_vm6, %v972_v55, %v967_v56 }
 0x152   : > { %v937_v54 = vpop.permute.xlu1 %936 }
 0x153   : > { %v979_v58 = vrot.slane %v937_v54, %v2692_v37 }
 0x155   : > { %v981_v2 = vsel %vm980_vm7, %v979_v58, %v974_v62 }
 0x156   : > { %v940_v61 = vpop.permute.xlu1 %939 }
 0x157   : > { %v986_v0 = vrot.slane %v940_v61, %v2699_v57 }
 0x159   : > { %v988_v3 = vsel %vm987_vm8, %v986_v0, %v981_v2 }
 0x15a   : > { %v995_v36 = vrot.slane %v988_v3, %v2526_v47 }
 0x15c   : > { %v1002_v4 = vrot.slane %v995_v36, %v2526_v47 }
 0x15e   : > { %v1004_v12 = vadd.f32 %v1002_v4, %v379_v1 }
 0x160   : > { %1006 = vst.msk [vmem:[#allocation2] sm:$0x1] %vm362_vm1, %v1004_v12 }
 0x167   : > { %v1636_v6 = vld [vmem:[#allocation2] sm:$0x1] }
 0x168   : > { %v1637_v13 = vmul.f32 0.00390625, %v1636_v6 }
 0x16a   : > { %v2711_v16 = vmul.f32 %v1637_v13, %v1636_v6  ;;  %2146 = vmatmul.mubr.msk.f32.vlgmr.msra.gmra.mrb[0].mxu0 %vm1658_vm9, %v1637_v13 }
 0x16b   : > { %2172 = vmatprep.mubr.msk.f32.mxu0 %vm2354_vm2, %v2352_v60 }
 0x16f   : > { %v1027_v17 = vpop.xlane.xlu0 %1026 }
 0x170   : > { %v1087_v7 = vrot.slane %v1027_v17, %v2502_v38  ;;  %v1091_v10 = vrot.slane %v1027_v17, %v2505_v39  ;;  %v1095_v11 = vrot.slane %v1027_v17, %v2508_v40  ;;  %v1099_v5 = vrot.slane %v1027_v17, %v2511_v41 }
 0x171   : > { %v1103_v26 = vrot.slane %v1027_v17, %v2514_v42  ;;  %v1107_v18 = vrot.slane %v1027_v17, %v2517_v43  ;;  %v1111_v19 = vrot.slane %v1027_v17, %v2520_v44  ;;  %v1115_v20 = vrot.slane %v1027_v17, %v2523_v45 }
 0x172   : > { %v1301_v21 = vcombine.low %v1087_v7, %v1091_v10  ;;  %v1302_v22 = vcombine.low %v1095_v11, %v1099_v5 }
 0x173   : > { %v1036_v23 = vpop.xlane.xlu0 %1035  ;;  %v1303_v24 = vcombine.low %v1103_v26, %v1107_v18  ;;  %v1304_v29 = vcombine.low %v1111_v19, %v1115_v20 }
 0x174   : > { %v1311_v25 = vrot.slane %v1301_v21, %v2526_v47  ;;  %v1318_v8 = vrot.slane %v1302_v22, %v2526_v47  ;;  %v1183_v27 = vrot.slane %v1036_v23, %v2502_v38  ;;  %v1187_v28 = vrot.slane %v1036_v23, %v2505_v39 }
 0x175   : > { %v1325_v32 = vrot.slane %v1303_v24, %v2526_v47  ;;  %v1332_v30 = vrot.slane %v1304_v29, %v2526_v47  ;;  %v1191_v31 = vrot.slane %v1036_v23, %v2508_v40  ;;  %v1195_v15 = vrot.slane %v1036_v23, %v2511_v41 }
 0x176   : > { %v1333_v46 = vcombine.low %v1311_v25, %v1318_v8  ;;  %v1199_v34 = vrot.slane %v1036_v23, %v2514_v42  ;;  %v1203_v49 = vrot.slane %v1036_v23, %v2517_v43  ;;  %v1207_v51 = vrot.slane %v1036_v23, %v2520_v44 }
 0x177   : > { %v1044_v52 = vpop.xlane.xlu0 %1043  ;;  %v1334_v50 = vcombine.low %v1325_v32, %v1332_v30  ;;  %v1211_v53 = vrot.slane %v1036_v23, %v2523_v45  ;;  %v1448_v54 = vcombine.low %v1183_v27, %v1187_v28  ;;  %v1449_v55 = vcombine.low %v1191_v31, %v1195_v15 }
 0x178   : > { %v1247_v58 = vrot.slane %v1044_v52, %v2502_v38  ;;  %v1251_v59 = vrot.slane %v1044_v52, %v2505_v39  ;;  %v1341_v56 = vrot.slane %v1333_v46, %v2526_v47  ;;  %v1450_v61 = vcombine.low %v1199_v34, %v1203_v49 }
 0x179   : > { %v1348_v62 = vrot.slane %v1334_v50, %v2526_v47  ;;  %v1451_v0 = vcombine.low %v1207_v51, %v1211_v53  ;;  %v1458_v2 = vrot.slane %v1448_v54, %v2526_v47  ;;  %v1465_v3 = vrot.slane %v1449_v55, %v2526_v47 }
 0x17a   : > { %v1472_v36 = vrot.slane %v1450_v61, %v2526_v47  ;;  %v1546_v1 = vcombine.low %v1247_v58, %v1251_v59 }
 0x17b   : > { %v1349_v4 = vcombine.low %v1341_v56, %v1348_v62  ;;  %v1479_v12 = vrot.slane %v1451_v0, %v2526_v47  ;;  %v1480_v6 = vcombine.low %v1458_v2, %v1465_v3 }
 0x17c   : > { %v1553_v7 = vrot.slane %v1546_v1, %v2526_v47 }
 0x17d   : > { %1565 = vperm.xlu0 %2255, %v1349_v4   ;;  %v1481_v13 = vcombine.low %v1472_v36, %v1479_v12  ;;  %v1488_v17 = vrot.slane %v1480_v6, %v2526_v47 }
 0x17e   : > { %v1560_v5 = vrot.slane %v1553_v7, %v2526_v47 }
 0x17f   : > { %v1495_v10 = vrot.slane %v1481_v13, %v2526_v47 }
 0x181   : > { %v1496_v11 = vcombine.low %v1488_v17, %v1495_v10 }
 0x183   : > { %1574 = vperm.xlu0 %2255, %v1496_v11  }
 0x187   : > { %1580 = vperm.xlu0 %2255, %v1560_v5  }
 0x188   : > { %v1024_v26 = vpop.xlane.xlu1 %1023 }
 0x189   : > { %v1055_v18 = vrot.slane %v1024_v26, %v2502_v38  ;;  %v1059_v19 = vrot.slane %v1024_v26, %v2505_v39  ;;  %v1063_v20 = vrot.slane %v1024_v26, %v2508_v40  ;;  %v1067_v21 = vrot.slane %v1024_v26, %v2511_v41 }
 0x18a   : > { %v1071_v22 = vrot.slane %v1024_v26, %v2514_v42  ;;  %v1075_v23 = vrot.slane %v1024_v26, %v2517_v43  ;;  %v1079_v24 = vrot.slane %v1024_v26, %v2520_v44  ;;  %v1083_v29 = vrot.slane %v1024_v26, %v2523_v45 }
 0x18b   : > { %v1252_v25 = vcombine.low %v1055_v18, %v1059_v19  ;;  %v1253_v8 = vcombine.low %v1063_v20, %v1067_v21 }
 0x18c   : > { %v1030_v27 = vpop.xlane.xlu1 %1029  ;;  %v1254_v28 = vcombine.low %v1071_v22, %v1075_v23  ;;  %v1255_v32 = vcombine.low %v1079_v24, %v1083_v29 }
 0x18d   : > { %v1262_v30 = vrot.slane %v1252_v25, %v2526_v47  ;;  %v1269_v31 = vrot.slane %v1253_v8, %v2526_v47  ;;  %v1119_v15 = vrot.slane %v1030_v27, %v2502_v38  ;;  %v1123_v46 = vrot.slane %v1030_v27, %v2505_v39 }
 0x18e   : > { %v1276_v34 = vrot.slane %v1254_v28, %v2526_v47  ;;  %v1283_v49 = vrot.slane %v1255_v32, %v2526_v47  ;;  %v1127_v51 = vrot.slane %v1030_v27, %v2508_v40  ;;  %v1131_v52 = vrot.slane %v1030_v27, %v2511_v41 }
 0x18f   : > { %v1284_v50 = vcombine.low %v1262_v30, %v1269_v31  ;;  %v1135_v53 = vrot.slane %v1030_v27, %v2514_v42  ;;  %v1139_v54 = vrot.slane %v1030_v27, %v2517_v43  ;;  %v1143_v55 = vrot.slane %v1030_v27, %v2520_v44 }
 0x190   : > { %v1033_v58 = vpop.xlane.xlu1 %1032  ;;  %v1285_v59 = vcombine.low %v1276_v34, %v1283_v49  ;;  %v1147_v56 = vrot.slane %v1030_v27, %v2523_v45  ;;  %v1350_v61 = vcombine.low %v1119_v15, %v1123_v46  ;;  %v1351_v62 = vcombine.low %v1127_v51, %v1131_v52 }
 0x191   : > { %v1292_v0 = vrot.slane %v1284_v50, %v2526_v47  ;;  %v1352_v2 = vcombine.low %v1135_v53, %v1139_v54  ;;  %v1151_v3 = vrot.slane %v1033_v58, %v2502_v38  ;;  %v1155_v36 = vrot.slane %v1033_v58, %v2505_v39 }
 0x192   : > { %v1299_v1 = vrot.slane %v1285_v59, %v2526_v47  ;;  %v1353_v4 = vcombine.low %v1143_v55, %v1147_v56  ;;  %v1360_v12 = vrot.slane %v1350_v61, %v2526_v47  ;;  %v1367_v6 = vrot.slane %v1351_v62, %v2526_v47 }
 0x193   : > { %v1374_v13 = vrot.slane %v1352_v2, %v2526_v47  ;;  %v1159_v17 = vrot.slane %v1033_v58, %v2508_v40  ;;  %v1163_v7 = vrot.slane %v1033_v58, %v2511_v41  ;;  %v1167_v10 = vrot.slane %v1033_v58, %v2514_v42 }
 0x194   : > { %v1039_v11 = vpop.xlane.xlu1 %1038  ;;  %v1300_v5 = vcombine.low %v1292_v0, %v1299_v1  ;;  %v1381_v26 = vrot.slane %v1353_v4, %v2526_v47  ;;  %v1382_v18 = vcombine.low %v1360_v12, %v1367_v6  ;;  %v1171_v19 = vrot.slane %v1033_v58, %v2517_v43  ;;  %v1744_v1 = vld [vmem:[%s2928_s3] sm:$0x7] }
 0x195   : > { %v1175_v20 = vrot.slane %v1033_v58, %v2520_v44  ;;  %v1179_v21 = vrot.slane %v1033_v58, %v2523_v45  ;;  %v1399_v22 = vcombine.low %v1151_v3, %v1155_v36  ;;  %v1400_v23 = vcombine.low %v1159_v17, %v1163_v7  ;;  %2149 = vmatpush3.msk.msra.mxu1 %vm1750_vm10, %v1744_v1 }
 0x196   : > { %1562 = vperm.xlu1 %2254, %v1300_v5   ;;  %v1383_v24 = vcombine.low %v1374_v13, %v1381_v26  ;;  %v1390_v29 = vrot.slane %v1382_v18, %v2526_v47  ;;  %v1401_v25 = vcombine.low %v1167_v10, %v1171_v19  ;;  %v1215_v8 = vrot.slane %v1039_v11, %v2502_v38 }
 0x197   : > { %v1402_v27 = vcombine.low %v1175_v20, %v1179_v21  ;;  %v1409_v28 = vrot.slane %v1399_v22, %v2526_v47  ;;  %v1416_v32 = vrot.slane %v1400_v23, %v2526_v47  ;;  %v1219_v30 = vrot.slane %v1039_v11, %v2505_v39  ;;  %2184 = vmatprep.subr.bf16.mxu1 %v2353_v63 }
 0x198   : > { %v1397_v31 = vrot.slane %v1383_v24, %v2526_v47  ;;  %v1423_v15 = vrot.slane %v1401_v25, %v2526_v47  ;;  %v1223_v46 = vrot.slane %v1039_v11, %v2508_v40  ;;  %v1227_v34 = vrot.slane %v1039_v11, %v2511_v41 }
 0x199   : > { %v1430_v49 = vrot.slane %v1402_v27, %v2526_v47  ;;  %v1431_v51 = vcombine.low %v1409_v28, %v1416_v32  ;;  %v1231_v38 = vrot.slane %v1039_v11, %v2514_v42  ;;  %v1235_v52 = vrot.slane %v1039_v11, %v2517_v43 }
 0x19a   : > { %v1398_v50 = vcombine.low %v1390_v29, %v1397_v31  ;;  %v1239_v53 = vrot.slane %v1039_v11, %v2520_v44  ;;  %v1243_v39 = vrot.slane %v1039_v11, %v2523_v45  ;;  %v1497_v54 = vcombine.low %v1215_v8, %v1219_v30  ;;  %v1007_v29 = vld [vmem:[#allocation3] sm:$0x1] }
 0x19b   : > { %v1432_v55 = vcombine.low %v1423_v15, %v1430_v49  ;;  %v1439_v58 = vrot.slane %v1431_v51, %v2526_v47  ;;  %v1498_v59 = vcombine.low %v1223_v46, %v1227_v34  ;;  %v1499_v40 = vcombine.low %v1231_v38, %v1235_v52  ;;  %v1830_v51 = vld [vmem:[%s2930_s5] sm:$0xff]  ;;  %v1831_v38 = vld [vmem:[%s2930_s5 + $0x8] sm:$0xff] }
 0x19c   : > { %1568 = vperm.xlu1 %2254, %v1398_v50   ;;  %v1500_v41 = vcombine.low %v1239_v53, %v1243_v39  ;;  %v1507_v56 = vrot.slane %v1497_v54, %v2526_v47  ;;  %v2185_v39 = vpack.c.bf16 %v1831_v38, %v1830_v51 }
 0x19d   : > { %v1446_v61 = vrot.slane %v1432_v55, %v2526_v47  ;;  %v1514_v42 = vrot.slane %v1498_v59, %v2526_v47  ;;  %v1521_v43 = vrot.slane %v1499_v40, %v2526_v47  ;;  %v1833_v55 = vld [vmem:[%s2930_s5 + $0x18] sm:$0xff]  ;;  %v1834_v59 = vld [vmem:[%s2930_s5 + $0x20] sm:$0xff]  ;;  %v1835_v40 = vld [vmem:[%s2930_s5 + $0x28] sm:$0xff] }
 0x19e   : > { %v1528_v44 = vrot.slane %v1500_v41, %v2526_v47 }
 0x19f   : > { %v1447_v62 = vcombine.low %v1439_v58, %v1446_v61  ;;  %v1529_v45 = vcombine.low %v1507_v56, %v1514_v42  ;;  %v2191_v56 = vpack.c.bf16 %v1835_v40, %v1834_v59  ;;  %v1836_v42 = vld [vmem:[%s2930_s5 + $0x30] sm:$0x3] }
 0x1a0   : > { %v1530_v0 = vcombine.low %v1521_v43, %v1528_v44 }
 0x1a1   : > { %1571 = vperm.xlu1 %2254, %v1447_v62   ;;  %v1537_v2 = vrot.slane %v1529_v45, %v2526_v47 }
 0x1a2   : > { %v1544_v3 = vrot.slane %v1530_v0, %v2526_v47  ;;  %v1837_v0 = vld [vmem:[%s2931_s6] sm:$0x1] }
 0x1a4   : > { %v1545_v36 = vcombine.low %v1537_v2, %v1544_v3 }
 0x1a6   : > { %1577 = vperm.xlu1 %2254, %v1545_v36  }
 0x1fc   : > { %v1566_v12 = vpop.permute.xlu0 %1565 }
 0x1fd   : > { %v1589_v10 = vrot.slane %v1566_v12, %v2675_v9 }
 0x202   : > { %v1575_v13 = vpop.permute.xlu0 %1574 }
 0x203   : > { %v1604_v21 = vrot.slane %v1575_v13, %v2688_v48  ;;  %v1657_v48 = vld [vmem:[%s2927_s2] sm:$0x1] }
 0x206   : > { %v1581_v19 = vpop.permute.xlu0 %1580 }
 0x215   : > { %v1563_v4 = vpop.permute.xlu1 %1562 }
 0x216   : > { %v1585_v17 = vrot.slane %v1563_v4, %v2678_v14  ;;  %v1614_v14 = vrot.slane %v1581_v19, %v2699_v57  ;;  %v1924_v19 = vld [vmem:[%s2933_s8] sm:$0x1] }
 0x218   : > { %v1590_v26 = vsel %vm952_vm3, %v1589_v10, %v1585_v17 }
 0x21b   : > { %v1569_v6 = vpop.permute.xlu1 %1568 }
 0x21c   : > { %v1594_v7 = vrot.slane %v1569_v6, %v2681_v35 }
 0x21e   : > { %v1595_v18 = vsel %vm959_vm4, %v1594_v7, %v1590_v26 }
 0x220   : > { %v1572_v11 = vpop.permute.xlu1 %1571 }
 0x221   : > { %v1599_v5 = vrot.slane %v1572_v11, %v2685_v33 }
 0x223   : > { %v1600_v20 = vsel %vm966_vm5, %v1599_v5, %v1595_v18  ;;  %v1745_v5 = vld [vmem:[%s2929_s4] sm:$0x1] }
 0x224   : > { %v1605_v35 = vsel %vm973_vm6, %v1604_v21, %v1600_v20 }
 0x225   : > { %v1578_v22 = vpop.permute.xlu1 %1577 }
 0x226   : > { %v1609_v23 = vrot.slane %v1578_v22, %v2692_v37 }
 0x228   : > { %v1610_v9 = vsel %vm980_vm7, %v1609_v23, %v1605_v35 }
 0x229   : > { %v1615_v33 = vsel %vm987_vm8, %v1614_v14, %v1610_v9 }
 0x22a   : > { %v1622_v24 = vrot.slane %v1615_v33, %v2526_v47 }
 0x22c   : > { %v1629_v25 = vrot.slane %v1622_v24, %v2526_v47 }
 0x22e   : > { %v1631_v8 = vadd.f32 %v1629_v25, %v1007_v29 }
 0x230   : > { %1632 = vst.msk [vmem:[#allocation3] sm:$0x1] %vm362_vm1, %v1631_v8 }
 0x237   : > { %v1638_v30 = vld [vmem:[#allocation3] sm:$0x1] }
 0x238   : > { %v1640_v46 = vsub.f32 %v1638_v30, %v2711_v16  ;;  %v1832_v16 = vld [vmem:[%s2930_s5 + $0x10] sm:$0xff] }
 0x239   : > { %v2188_v58 = vpack.c.bf16 %v1833_v55, %v1832_v16 }
 0x23a   : > { %v1641_v47 = vmul.f32 0.003921569, %v1640_v46 }
 0x23c   : > { %v1642_v49 = vmax.f32 %v1641_v47, 0.0 }
 0x23d   : > { %v1731_v37 = vpop.f32.mrb[0].mxu0 }
 0x23e   : > { %v1732_v57 = vadd.f32 %v1731_v37, %v1657_v48  ;;  %v2147_v27 = vpop.f32.mrb[1].mxu0  ;;  %vm1645_vm12 = vcmp.eq.f32.partialorder %v1642_v49, inf  ;;  %v1648_v44 = vand.u32 2147483648, %v1642_v49  ;;  %vm1647_vm13 = vcmp.eq.f32.partialorder %v1642_v49, 0.0 }
 0x240   : > { %v1736_v28 = vmul.f32 0.044715, %v1732_v57  ;;  %v1735_v50 = vmul.f32 0.5, %v1732_v57 }
 0x242   : > { %v1737_v32 = vmul.f32 %v1736_v28, %v1732_v57 }
 0x244   : > { %v1738_v31 = vmul.f32 %v1737_v32, %v1732_v57 }
 0x246   : > { %v1739_v15 = vadd.f32 %v1738_v31, %v1732_v57 }
 0x248   : > { %v1740_v34 = vmul.f32 0.7978846, %v1739_v15 }
 0x24a   : > { %2256 = vtanh.f32 %v1740_v34 }
 0x24b   : > { %2258 = vrsqrt.f32 %v1642_v49 }
 0x254   : > { %v2257_v52 = vpop.eup %2256 }
 0x255   : > { %v1742_v53 = vadd.f32 1.0, %v2257_v52  ;;  %v2259_v41 = vpop.eup %2258 }
 0x256   : > { %v1644_v61 = vmul.f32 %v2259_v41, %v1642_v49 }
 0x257   : > { %v1743_v54 = vmul.f32 %v1742_v53, %v1735_v50 }
 0x258   : > { %v1646_v43 = vsel %vm1645_vm12, %v1642_v49, %v1644_v61 }
 0x259   : > { %2151 = vmatmul.mubr.msk.f32.vlgmr.msra.gmra.mrb[0].mxu1 %vm1746_vm11, %v1743_v54  ;;  %v1649_v62 = vsel %vm1647_vm13, %v1648_v44, %v1646_v43 }
 0x25a   : > { %2186 = vmatpush3.bf16.msra.mxu1 %v2185_v39  ;;  %2167 = vmatprep.mubr.msk.f32.mxu1 %vm2354_vm2, %v2352_v60 }
 0x25b   : > { %2187 = vmatprep.subr.bf16.mxu1 %v2353_v63 }
 0x25e   : > { %2189 = vmatpush3.bf16.msra.mxu1 %v2188_v58 }
 0x25f   : > { %2190 = vmatprep.subr.bf16.mxu1 %v2353_v63  ;;  %v1923_v63 = vld [vmem:[%s2932_s7] sm:$0x7] }
 0x260   : > { %2171 = vmatpush3.msk.msra.mxu0 %vm1750_vm10, %v1923_v63 }
 0x262   : > { %2192 = vmatpush3.bf16.msra.mxu1 %v2191_v56 }
 0x263   : > { %2165 = vmatprep.subr.mxu1 %v2352_v60 }
 0x266   : > { %2166 = vmatpush3.msk.msra.mxu1 %vm398_vm0, %v1836_v42 }
 0x267   : > { %2168 = vmatmul.mubr.msk.f32.vlgmr.msra.gmra.mrb[2].mxu1 %vm1658_vm9, %v1649_v62 }
 0x32c   : > { %v1820_v45 = vpop.f32.mrb[0].mxu1 }
 0x32d   : > { %v2152_v60 = vpop.f32.mrb[1].mxu1  ;;  %v1821_v26 = vadd.f32 %v1820_v45, %v1745_v5 }
 0x32f   : > { %v2102_v18 = vmul.f32 -1.442695, %v1821_v26 }
 0x33a   : > { %v1910_v2 = vpop.f32.mrb[2].mxu1 }
 0x33b   : > { %v1911_v3 = vadd.f32 %v1910_v2, %v1837_v0  ;;  %v2169_v36 = vpop.f32.mrb[3].mxu1 }
 0x33d   : > { %v1915_v1 = vmul.f32 0.044715, %v1911_v3  ;;  %v1914_v7 = vmul.f32 0.5, %v1911_v3 }
 0x33f   : > { %v1916_v4 = vmul.f32 %v1915_v1, %v1911_v3 }
 0x341   : > { %v1917_v12 = vmul.f32 %v1916_v4, %v1911_v3 }
 0x343   : > { %v1918_v6 = vadd.f32 %v1917_v12, %v1911_v3 }
 0x345   : > { %v1919_v13 = vmul.f32 0.7978846, %v1918_v6 }
 0x347   : > { %2260 = vtanh.f32 %v1919_v13 }
 0x348   : > { %2262 = vpow2.f32 %v2102_v18 }
 0x351   : > { %v2261_v17 = vpop.eup %2260 }
 0x352   : > { %v1921_v10 = vadd.f32 1.0, %v2261_v17  ;;  %v2263_v14 = vpop.eup %2262 }
 0x353   : > { %v1827_v35 = vadd.f32 1.0, %v2263_v14 }
 0x354   : > { %v1922_v11 = vmul.f32 %v1921_v10, %v1914_v7 }
 0x356   : > { %2173 = vmatmul.mubr.msk.f32.vlgmr.msra.gmra.mrb[2].mxu0 %vm1746_vm11, %v1922_v11 }
 0x429   : > { %v1997_v20 = vpop.f32.mrb[2].mxu0 }
 0x42a   : > { %v1998_v21 = vadd.f32 %v1997_v20, %v1924_v19  ;;  %v2174_v22 = vpop.f32.mrb[3].mxu0 }
 0x42c   : > { %v2107_v23 = vmul.f32 -1.442695, %v1998_v21 }
 0x42e   : > { %2264 = vpow2.f32 %v2107_v23 }
 0x42f   : > { %2266 = vrcp.f32 %v1827_v35 }
 0x438   : > { %v2265_v9 = vpop.eup %2264 }
 0x439   : > { %v2004_v33 = vadd.f32 1.0, %v2265_v9  ;;  %v2267_v24 = vpop.eup %2266 }
 0x43b   : > { %2268 = vrcp.f32 %v2004_v33 }
 0x445   : > { %v2269_v29 = vpop.eup %2268 }
 0x446   : > { %v2007_v25 = vadd.f32 %v2269_v29, %v2267_v24 }
 0x448   : > { %v2008_v8 = vmul.f32 0.5, %v2007_v25 }
 0x44a   : > { %2009 = vst.msk [vmem:[%s347_s26] sm:$0x1] %vm362_vm1, %v2008_v8 }
 0x44b   : > { %2283 = shalt.err (!%p2280_p5)
}
 0x44c   : > { %s2284_s24 = scalar_lea.hbm %s2877_s15, 16  ;;  %s2288_s28 = scalar_lea.hbm %s2934_s9, 32 }
 0x44d   : > { %p2285_p6 = scmp.ne.s32.totalorder %s2877_s15, %s2284_s24  ;;  %p2289_p10 = scmp.lt.u32.totalorder %s2877_s15, %s2934_s9 }
 0x44e   : > { %p2290_p11 = scmp.lt.u32.totalorder %s2288_s28, %s2284_s24  ;;  %p2292_p13 = scmp.lt.u32.totalorder %s2284_s24, %s2877_s15 }
 0x44f   : > { %p2286_p7 = pnand %p2285_p6, %p2446_p4 }
 0x450   : > { %p2291_p12 = por %p2290_p11, %p2289_p10 }
 0x451   : > { %p2287_p9 = pneg %p2286_p7 }
 0x452   : > { %p2293_p0 = por %p2292_p13, %p2291_p12 }
 0x454   : > { %p2294_p1 = pnand %p2293_p0, %p2287_p9 }
 0x456   : > { %2297 = shalt.err (!%p2294_p1)
}
 0x457   : > { %2194 = dma.vmem_to_hbm [thread:$0]  (%p2446_p4), %s2879_s27, 16, %s2877_s15, %s2011_s16  }
 0x458 PF: > { %p2200_p2 = scmp.ge.s32.totalorder %s2348_s14, 2  ;;  %s2035_s18 = sand.u32 1, %s2328_s30  }
 0x459   : > { %s2036_s20 = scalar_lea.sflag [#allocation5], %s2035_s18 }
 0x45a   : > { %p2197_p3 = pnand %p2200_p2, %p2453_p8 }
 0x45c   : > { %2323 = dma.done.wait (!%p2197_p3), %s2036_s20, 16  }
 0x45d   : > { %2325 = vsyncadd (!%p2197_p3), %s2036_s20, 4294967280  ;;  %s22_s14 = sadd.s32 1, %s2348_s14   ;;  %s2937_s30 = smov %s2332_s10 }
 0x45e   : > { %p19_p5 = scmp.ge.s32.totalorder %s22_s14, 4   ;;  %s2938_s10 = smov %s2336_s11 }
 0x45f   : > { %s2939_s11 = smov %s2459_s22  ;;  %s2940_s12 = smov %s2344_s13 }
 0x460   : > { %s2941_s13 = smov %s2943_s17  ;;  %21 = sbr.rel (!%p19_p5) target bundleno = 4 (0x4), region = 99 }
 0x467   :  { %2040 = vsyncpa [#allocation5], 1 }
 0x468   :  { %2042 = vsyncpa [#allocation5 + $0x1], 1 }

</bundles_post_ra>
